<compile_context>
chip_gen: v7x
topology: tpu7x:2x2x1
jax: 0.10.0
libtpu: 0.0.40
codegen_flags: <defaults>
</compile_context>

<pallas_src>
import jax
import jax.numpy as jnp
from jax.experimental import pallas as pl
from jax.experimental.pallas import tpu as pltpu


# -----------------------------------------------------------------------------
# Dropout kernel: out[b, :] = keep[b] * token[b, :]   (token viewed as (B, L*D))
# -----------------------------------------------------------------------------
def _batch_dropout_kernel(keep_ref, tok_ref, out_ref):
    # keep_ref: (B, 1)   tok_ref/out_ref: (B, tile_cols)
    # One broadcast multiply per vreg; vld/vst remain the binding slots (HBM-bound).
    out_ref[...] = tok_ref[...] * keep_ref[...]


def _choose_tile_cols(total_cols: int, batch: int, itemsize: int,
                      max_block_bytes: int) -> int:
    """Largest lane-dim tile (multiple of 128, ideally dividing total_cols) whose
    (batch, tile_cols) block fits the per-block byte budget."""
    row_bytes = max(1, batch * itemsize)
    cap_cols = max(1, max_block_bytes // row_bytes)
    if cap_cols >= total_cols:
        return total_cols                      # whole slab in one block
    cap128 = (cap_cols // 128) * 128
    if cap128 >= 128:
        # Prefer an even divisor of total_cols -> no ragged masked final block.
        t = cap128
        while t >= 128:
            if total_cols % t == 0:
                return t
            t -= 128
        return cap128                          # ragged fallback (Pallas masks last block)
    # Budget smaller than one 128-lane stripe: use one stripe (or the full width).
    return min(128, total_cols)


def batch_dropout(keep: jax.Array, token: jax.Array,
                  *, max_block_bytes: int = 3 * 1024 * 1024,
                  donate_input: bool = False) -> jax.Array:
    """out[b] = keep[b] * token[b] via a single streaming Pallas kernel.

    Budget note: Pallas double-buffers the token input and the output, so VMEM use
    is ~4 * max_block_bytes + the (B, 1) keep block (lane-padded to 128, i.e.
    B*512 bytes per buffer) -- ~12 MiB at the 3 MiB default, under every
    generation's scoped-VMEM default (16 MiB v5e, 32 MiB v6e/v7x).
    """
    orig_shape = token.shape
    B = token.shape[0]
    C = token.size // B                         # L*D (lane-dense columns)

    # Lane-dense 2-D view; reshape is free wrapper-side layout plumbing.
    tok2 = token.reshape(B, C)
    keep_col = keep.astype(token.dtype).reshape(B, 1)

    tile_cols = _choose_tile_cols(C, B, token.dtype.itemsize, max_block_bytes)
    grid = (pl.cdiv(C, tile_cols),)

    out = pl.pallas_call(
        _batch_dropout_kernel,
        out_shape=jax.ShapeDtypeStruct((B, C), token.dtype),
        grid_spec=pl.GridSpec(
            grid=grid,
            in_specs=[
                pl.BlockSpec((B, 1), lambda i: (0, 0)),          # keep column (shared)
                pl.BlockSpec((B, tile_cols), lambda i: (0, i)),  # token column tile
            ],
            out_specs=pl.BlockSpec((B, tile_cols), lambda i: (0, i)),
        ),
        compiler_params=pltpu.CompilerParams(
            dimension_semantics=("parallel",)),   # megacore-shardable on v7x when grid >= 2
        input_output_aliases={1: 0} if donate_input else {},
    )(keep_col, tok2)
    return out.reshape(orig_shape)


# -----------------------------------------------------------------------------
# Thin Python wrapper mirroring the PyTorch TextAttr module
# -----------------------------------------------------------------------------
class TextAttr:
    def __init__(self, input_key, dropout_rate=0.0):
        self.input_key = input_key
        self.dropout_rate = dropout_rate

    def forward(self, token: jax.Array):
        # Pure identity pass-through: no kernel, no HBM roundtrip.
        return {"crossattn_emb": token}

    def random_dropout_input(self, in_tensor: jax.Array, rng_key,
                             dropout_rate=None, key=None):
        # Matches the PyTorch override: inputs whose key contains 'mask' are not dropped.
        if key is not None and "mask" in key:
            return in_tensor
        rate = self.dropout_rate if dropout_rate is None else dropout_rate
        # Fast path: rate == 0 keeps every sample -> identity, skip the kernel entirely.
        if isinstance(rate, (int, float)) and float(rate) == 0.0:
            return in_tensor
        keep = jax.random.bernoulli(
            rng_key, p=1.0 - float(rate), shape=(in_tensor.shape[0],)
        ).astype(in_tensor.dtype)
        # TODO(synk): in a full model this multiply should be fused into the
        # crossattn_emb consumer (QKV projection) -- a standalone read+write of the
        # whole token tensor is pure HBM traffic and blocks XLA fusion.
        return batch_dropout(keep, in_tensor)


if __name__ == "__main__":
    rng = jax.random.PRNGKey(0)
    k_tok, k_drop = jax.random.split(rng)

    B, L, D = 2, 8, 32  # batch, text seq len, cross-attn hidden dim
    token = jax.random.normal(k_tok, (B, L, D), dtype=jnp.float32)

    model = TextAttr(input_key=["t5_text_embeddings"], dropout_rate=0.0)

    # forward: identity pass-through (no kernel launched).
    out = model.forward(token)
    emb = jax.block_until_ready(out["crossattn_emb"])
    assert emb.shape == (B, L, D)
    assert jnp.array_equal(emb, token), "forward must be an identity pass-through"

    # dropout_rate == 0.0 fast path: identity, no kernel.
    same = model.random_dropout_input(token, k_drop)
    assert same is token

    # dropout kernel (rate = 0.5): per-batch bernoulli keep-mask multiply.
    dropped = jax.block_until_ready(
        model.random_dropout_input(token, k_drop, dropout_rate=0.5))
    keep_ref = jax.random.bernoulli(k_drop, p=0.5, shape=(B,)).astype(token.dtype)
    ref = token * keep_ref[:, None, None]
    assert jnp.allclose(dropped, ref), "batch dropout mismatch"

    # Multi-tile path: shrink the per-block budget to force grid > 1 (even split).
    keep_small = jnp.asarray([1.0, 0.0], dtype=token.dtype)
    tiled = jax.block_until_ready(
        batch_dropout(keep_small, token, max_block_bytes=1024))
    ref2 = token * keep_small[:, None, None]
    assert jnp.allclose(tiled, ref2), "multi-tile batch dropout mismatch"

    # 'mask'-keyed inputs bypass dropout entirely.
    masked = model.random_dropout_input(token, k_drop, dropout_rate=0.5,
                                        key="t5_text_mask")
    assert masked is token

    print("KERNEL_OK")
</pallas_src>

<mosaic_0001>
module attributes {stable_mosaic.version = 11 : i64} {
  func.func @_batch_dropout_kernel(%arg0: i32, %arg1: memref<2x1xf32, #tpu.memory_space<vmem>>, %arg2: memref<2x256xf32, #tpu.memory_space<vmem>>, %arg3: memref<2x256xf32, #tpu.memory_space<vmem>>) attributes {dimension_semantics = [#tpu.dimension_semantics<parallel>], iteration_bounds = array<i64: 1>, scalar_prefetch = 0 : i64, scratch_operands = 0 : i64, tpu.core_type = #tpu.core_type<tc>, window_params = [{pipeline_mode = #tpu.pipeline_mode<synchronous>, transform_indices = @transform_0, window_bounds = array<i64: 2, 1>}, {transform_indices = @transform_1, window_bounds = array<i64: 2, 256>}, {transform_indices = @transform_2, window_bounds = array<i64: 2, 256>}]} {
    %c0 = arith.constant 0 : index
    %c0_0 = arith.constant 0 : index
    %0 = vector.load %arg2[%c0, %c0_0] : memref<2x256xf32, #tpu.memory_space<vmem>>, vector<2x256xf32>
    %c0_1 = arith.constant 0 : index
    %c0_2 = arith.constant 0 : index
    %1 = vector.load %arg1[%c0_1, %c0_2] : memref<2x1xf32, #tpu.memory_space<vmem>>, vector<2x1xf32>
    %2 = vector.broadcast %1 : vector<2x1xf32> to vector<2x256xf32>
    %3 = arith.mulf %0, %2 : vector<2x256xf32>
    %c0_3 = arith.constant 0 : index
    %c0_4 = arith.constant 0 : index
    %4 = vector.load %arg3[%c0_3, %c0_4] : memref<2x256xf32, #tpu.memory_space<vmem>>, vector<2x256xf32>
    tpu.vector_store %arg3[%c0_3, %c0_4], %3 {strides = array<i32>} : memref<2x256xf32, #tpu.memory_space<vmem>>, vector<2x256xf32>,
    return
  }
  func.func @transform_0(%arg0: i32) -> (i32, i32) {
    %c0_i32 = arith.constant 0 : i32
    %c0_i32_0 = arith.constant 0 : i32
    %c0_i32_1 = arith.constant 0 : i32
    return %c0_i32, %c0_i32_0 : i32, i32
  }
  func.func @transform_1(%arg0: i32) -> (i32, i32) {
    %c0_i32 = arith.constant 0 : i32
    %c0_i32_0 = arith.constant 0 : i32
    return %c0_i32, %arg0 : i32, i32
  }
  func.func @transform_2(%arg0: i32) -> (i32, i32) {
    %c0_i32 = arith.constant 0 : i32
    %c0_i32_0 = arith.constant 0 : i32
    return %c0_i32, %arg0 : i32, i32
  }
}

</mosaic_0001>

<bundles_post_ra>
// kernel: tpu_custom_call.1
= control target key start
LH: loop header
LB: loop body
LE: loop exit
PB: predicated region body
PF: predicated region fallthrough
CT: control target
= control target key end

     0   :  { %v70_v1 = vmov 0   ;;  %s106_s0 = inlined_call_operand.vmem [shape: f32[2,1], index: 0, kind: input, shape index: {}]   ;;  %s107_s1 = inlined_call_operand.vmem [shape: f32[2,256], index: 1, kind: input, shape index: {}]   ;;  %s108_s2 = inlined_call_operand.hbm [shape: f32[2,256], index: 2, kind: output, shape index: {}]  }
   0x1   :  { %v13_v0 = vld [vmem:[%s106_s0] sm:$0x3]  ;;  %45 = vset.pattern.permute.xlu0 %v70_v1 }
   0x2   :  { %7 = vsyncpa [#allocation3], 0  ;;  %16 = vperm.xlu0 %45, %v13_v0   ;;  %v71_v2 = vmov 269488144   ;;  %v21_v4 = vlaneseq  ;;  %v12_v9 = vld [vmem:[%s107_s1] sm:$0xf] }
   0x3   :  { %v19_v3 = vunpack.c.l.s4 %v71_v2  ;;  %s72_s13 = smov [#allocation2]  }
   0x4   :  { %v22_v6 = vshrl.u32 %v21_v4, 7  ;;  %s34_s14 = sshll.u32 %s72_s13, 4  ;;  %s35_s14 = int_to_ptr.vmem [resolvable:$true] %s34_s14 }
   0x5   :  { %v20_v5 = vunpack.c.0.s8 %v19_v3  ;;  %s46_s0 = scalar_lea.vmem %s35_s14, 64  ;;  %p51_p1 = scmp.lt.s32.totalorder %s35_s14, %s35_s14 }
   0x6   :  { %p47_p0 = scmp.ne.s32.totalorder %s35_s14, %s46_s0  ;;  %p52_p2 = scmp.lt.s32.totalorder %s46_s0, %s46_s0 }
   0x7   :  { %v23_v7 = vsub.s32 %v20_v5, %v22_v6 }
   0x8   :  { %p53_p3 = por %p52_p2, %p51_p1 }
   0xa   :  { %p54_p4 = pnand %p53_p3, %p47_p0 }
  0x81   :  { %v17_v8 = vpop.permute.xlu0 %16 }
  0x82   :  { %v24_v10 = vrot.slane %v17_v8, %v23_v7 }
  0x84   :  { %v26_v11 = vmul.f32 %v24_v10, %v12_v9 }
  0x86   :  { %27 = vst [vmem:[#allocation2] sm:$0xf] %v26_v11 }
  0x87   :  { %57 = shalt.err (!%p54_p4)
}
  0x88   :  { %s58_s17 = scalar_lea.hbm %s108_s2, 64 }
  0x89   :  { %p59_p5 = scmp.ne.s32.totalorder %s108_s2, %s58_s17  ;;  %p62_p6 = scmp.lt.u32.totalorder %s58_s17, %s108_s2 }
  0x8b   :  { %p64_p7 = pnand %p62_p6, %p59_p5 }
  0x8d   :  { %67 = shalt.err (!%p64_p7)
}
  0x8e   :  { %37 = dma.vmem_to_hbm [thread:$0]  %s35_s14, 64, %s108_s2, [#allocation3]  }
  0x8f   :  { %68 = dma.done.wait [#allocation3], 64  }
  0x90   :  { %69 = vsyncadd [#allocation3], 4294967232 }
  0x91   :  { %41 = vsyncpa [#allocation3], 1 }

</bundles_post_ra>
